<compile_context>
chip_gen: v7x
topology: tpu7x:2x2x1
jax: 0.10.0
libtpu: 0.0.40
codegen_flags: <defaults>
</compile_context>

<pallas_src>
import functools

import jax
import jax.numpy as jnp
from jax.experimental import pallas as pl
from jax.experimental.pallas import tpu as pltpu

# ---- Hyper-parameters implied by LatentResnetFlow.__init__ ----------------------------------
DIM = 4            # data dimension
W_DIM = 3          # control-path latent dimension (w)
Z_DIM = 2          # static latent dimension (latent)
N_LAYERS = 2       # number of ContinuousIResNet layers
HIDDEN = (32, 32)  # MLP hidden dims
COND_DIM = 1 + W_DIM + Z_DIM   # [t, w, latent] conditioning fed to every layer's MLP

TILE_COLS = 1024   # rows (B*S) per grid step, mapped to lanes (multiple of 128)


def _round_up(n: int, m: int) -> int:
    return (n + m - 1) // m * m


# ---- Pallas kernel: all ResNet-flow layers, statically unrolled ------------------------------
def _flow_kernel(x_ref, cond_ref,
                 w1x_ref, w1c_ref, b1_ref, w2_ref, b2_ref, w3_ref, b3_ref, tw_ref,
                 out_ref, *, n_layers):
    # Feature-major: x (DIM, T), cond (COND_DIM, T) with sublane row 0 == t.
    x = x_ref[...].astype(jnp.float32)
    cond = cond_ref[...].astype(jnp.float32)
    t = cond[0:1, :]                                   # (1, T)

    for l in range(n_layers):                          # static unroll over flow layers
        # MLP layer 1 on concat([x, t, w, latent]) as a split matmul: W1x^T @ x + W1c^T @ cond.
        h = (jnp.dot(w1x_ref[l], x, preferred_element_type=jnp.float32)
             + jnp.dot(w1c_ref[l], cond, preferred_element_type=jnp.float32)
             + b1_ref[l])                              # (H1, T)
        h = jnp.maximum(h, 0.0)                        # ReLU
        h = jnp.dot(w2_ref[l], h, preferred_element_type=jnp.float32) + b2_ref[l]
        h = jnp.maximum(h, 0.0)
        r = jnp.dot(w3_ref[l], h, preferred_element_type=jnp.float32) + b3_ref[l]  # (DIM, T)
        tt = jnp.tanh(t * tw_ref[l])                   # TimeTanh(t): (1,T)*(DIM,1) -> (DIM,T), EUP
        x = x + tt * r                                 # i-ResNet residual update

    out_ref[...] = x.astype(out_ref.dtype)


# ---- Parameter construction (deterministic, synthetic) ---------------------------------------
def _spectral_normalize(w_stack, iters=50):
    # Effective weights of torch.nn.utils.spectral_norm at convergence: W / sigma_max(W).
    # Power iteration (all-JAX, no SVD lowering dependence); deterministic.
    def norm_one(w):
        v = jnp.ones((w.shape[1],), jnp.float32) / jnp.sqrt(float(w.shape[1]))

        def body(_, v):
            u = w @ v
            u = u / (jnp.linalg.norm(u) + 1e-12)
            v = w.T @ u
            v = v / (jnp.linalg.norm(v) + 1e-12)
            return v

        v = jax.lax.fori_loop(0, iters, body, v)
        sigma = jnp.linalg.norm(w @ v) + 1e-12
        return w / sigma

    return jax.vmap(norm_one)(w_stack)


def init_params(key):
    keys = jax.random.split(key, 7)
    in_dim = DIM + COND_DIM
    h1, h2 = HIDDEN

    def nrm(k, shape, s):
        return jax.random.normal(k, shape, jnp.float32) * s

    w1 = _spectral_normalize(nrm(keys[0], (N_LAYERS, in_dim, h1), 0.5))
    b1 = nrm(keys[1], (N_LAYERS, h1), 0.05)
    w2 = _spectral_normalize(nrm(keys[2], (N_LAYERS, h1, h2), 0.5))
    b2 = nrm(keys[3], (N_LAYERS, h2), 0.05)
    w3 = _spectral_normalize(nrm(keys[4], (N_LAYERS, h2, DIM), 0.5))
    b3 = nrm(keys[5], (N_LAYERS, DIM), 0.05)
    tw = nrm(keys[6], (N_LAYERS, DIM), 0.5)            # TimeTanh per-layer weights
    return dict(w1=w1, b1=b1, w2=w2, b2=b2, w3=w3, b3=b3, tw=tw)


# ---- Wrapper (glue + pallas_call) -------------------------------------------------------------
def latent_resnet_flow(x, t, w, latent, params):
    # x: (B, S, DIM) or (B, 1, DIM); t: (B, S, 1); w: (B, S, W_DIM); latent: (B, Z_DIM) or None
    B, S, _ = t.shape
    if x.shape[-2] == 1:
        x = jnp.repeat(x, S, axis=-2)                  # repeat_interleave over time
    if latent is not None:
        if latent.ndim == 2:
            latent = latent[:, None, :]
        if latent.shape[-2] == 1:
            latent = jnp.repeat(latent, S, axis=-2)
        w = jnp.concatenate([w, latent], axis=-1)      # (B, S, W_DIM + Z_DIM)
    cond = jnp.concatenate([t, w], axis=-1)            # (B, S, COND_DIM), feature 0 = t

    N = B * S
    tile = min(TILE_COLS, _round_up(N, 128))
    n_pad = _round_up(N, tile)

    # Feature-major slabs (feature on sublanes, rows on lanes), zero-padded ragged tail.
    x_fm = jnp.pad(x.reshape(N, DIM).astype(jnp.float32).T, ((0, 0), (0, n_pad - N)))
    cond_fm = jnp.pad(cond.reshape(N, COND_DIM).astype(jnp.float32).T, ((0, 0), (0, n_pad - N)))

    # Kernel-layout weights: transposed (W^T) stacks, biases as (L, out, 1) lane-broadcast cols.
    w1xT = jnp.swapaxes(params["w1"][:, :DIM, :], 1, 2)   # (L, H1, DIM)
    w1cT = jnp.swapaxes(params["w1"][:, DIM:, :], 1, 2)   # (L, H1, COND_DIM)
    b1 = params["b1"][..., None]                          # (L, H1, 1)
    w2T = jnp.swapaxes(params["w2"], 1, 2)                # (L, H2, H1)
    b2 = params["b2"][..., None]                          # (L, H2, 1)
    w3T = jnp.swapaxes(params["w3"], 1, 2)                # (L, DIM, H2)
    b3 = params["b3"][..., None]                          # (L, DIM, 1)
    tw = params["tw"][..., None]                          # (L, DIM, 1)

    kernel = functools.partial(_flow_kernel, n_layers=N_LAYERS)

    def col(r):
        return pl.BlockSpec((r, tile), lambda i: (0, i))

    def full(a):
        nd = a.ndim
        return pl.BlockSpec(a.shape, lambda i: (0,) * nd)

    out_fm = pl.pallas_call(
        kernel,
        out_shape=jax.ShapeDtypeStruct((DIM, n_pad), jnp.float32),
        grid=(n_pad // tile,),
        in_specs=[col(DIM), col(COND_DIM),
                  full(w1xT), full(w1cT), full(b1),
                  full(w2T), full(b2), full(w3T), full(b3), full(tw)],
        out_specs=col(DIM),
        compiler_params=pltpu.CompilerParams(dimension_semantics=("parallel",)),
    )(x_fm, cond_fm, w1xT, w1cT, b1, w2T, b2, w3T, b3, tw)

    return out_fm[:, :N].T.reshape(B, S, DIM)


# ---- Pure-JAX reference for correctness check --------------------------------------------------
def ref_forward(x, t, w, latent, params):
    B, S, _ = t.shape
    if x.shape[-2] == 1:
        x = jnp.repeat(x, S, axis=-2)
    if latent is not None:
        if latent.ndim == 2:
            latent = latent[:, None, :]
        if latent.shape[-2] == 1:
            latent = jnp.repeat(latent, S, axis=-2)
        w = jnp.concatenate([w, latent], axis=-1)
    z = jnp.concatenate([t, w], axis=-1)               # [t, w, latent]
    for l in range(N_LAYERS):
        inp = jnp.concatenate([x, z], axis=-1)
        h = jax.nn.relu(inp @ params["w1"][l] + params["b1"][l])
        h = jax.nn.relu(h @ params["w2"][l] + params["b2"][l])
        r = h @ params["w3"][l] + params["b3"][l]
        tt = jnp.tanh(t * params["tw"][l])             # TimeTanh
        x = x + tt * r
    return x


if __name__ == "__main__":
    key = jax.random.PRNGKey(0)
    kp, kx, kt, kw, kz = jax.random.split(key, 5)
    params = init_params(kp)

    B, S = 2, 16
    x = jax.random.normal(kx, (B, 1, DIM), jnp.float32)        # exercises repeat_interleave path
    t = jax.random.uniform(kt, (B, S, 1), jnp.float32)
    w = jax.random.normal(kw, (B, S, W_DIM), jnp.float32)
    latent = jax.random.normal(kz, (B, Z_DIM), jnp.float32)    # exercises unsqueeze + repeat path

    out = latent_resnet_flow(x, t, w, latent, params)
    out = jax.block_until_ready(out)

    ref = ref_forward(x, t, w, latent, params)
    assert out.shape == (B, S, DIM)
    assert bool(jnp.allclose(out, ref, atol=1e-4, rtol=1e-4)), (
        "max abs err = %f" % float(jnp.max(jnp.abs(out - ref))))
    print("KERNEL_OK")
</pallas_src>

<mosaic_0001>
module attributes {stable_mosaic.version = 11 : i64} {
  func.func @_flow_kernel(%arg0: i32, %arg1: memref<4x128xf32, #tpu.memory_space<vmem>>, %arg2: memref<6x128xf32, #tpu.memory_space<vmem>>, %arg3: memref<2x32x4xf32, #tpu.memory_space<vmem>>, %arg4: memref<2x32x6xf32, #tpu.memory_space<vmem>>, %arg5: memref<2x32x1xf32, #tpu.memory_space<vmem>>, %arg6: memref<2x32x32xf32, #tpu.memory_space<vmem>>, %arg7: memref<2x32x1xf32, #tpu.memory_space<vmem>>, %arg8: memref<2x4x32xf32, #tpu.memory_space<vmem>>, %arg9: memref<2x4x1xf32, #tpu.memory_space<vmem>>, %arg10: memref<2x4x1xf32, #tpu.memory_space<vmem>>, %arg11: memref<4x128xf32, #tpu.memory_space<vmem>>) attributes {dimension_semantics = [#tpu.dimension_semantics<parallel>], iteration_bounds = array<i64: 1>, scalar_prefetch = 0 : i64, scratch_operands = 0 : i64, tpu.core_type = #tpu.core_type<tc>, window_params = [{transform_indices = @transform_0, window_bounds = array<i64: 4, 128>}, {transform_indices = @transform_1, window_bounds = array<i64: 6, 128>}, {pipeline_mode = #tpu.pipeline_mode<synchronous>, transform_indices = @transform_2, window_bounds = array<i64: 2, 32, 4>}, {pipeline_mode = #tpu.pipeline_mode<synchronous>, transform_indices = @transform_3, window_bounds = array<i64: 2, 32, 6>}, {pipeline_mode = #tpu.pipeline_mode<synchronous>, transform_indices = @transform_4, window_bounds = array<i64: 2, 32, 1>}, {pipeline_mode = #tpu.pipeline_mode<synchronous>, transform_indices = @transform_5, window_bounds = array<i64: 2, 32, 32>}, {pipeline_mode = #tpu.pipeline_mode<synchronous>, transform_indices = @transform_6, window_bounds = array<i64: 2, 32, 1>}, {pipeline_mode = #tpu.pipeline_mode<synchronous>, transform_indices = @transform_7, window_bounds = array<i64: 2, 4, 32>}, {pipeline_mode = #tpu.pipeline_mode<synchronous>, transform_indices = @transform_8, window_bounds = array<i64: 2, 4, 1>}, {pipeline_mode = #tpu.pipeline_mode<synchronous>, transform_indices = @transform_9, window_bounds = array<i64: 2, 4, 1>}, {transform_indices = @transform_10, window_bounds = array<i64: 4, 128>}]} {
    %c0 = arith.constant 0 : index
    %c0_0 = arith.constant 0 : index
    %0 = vector.load %arg1[%c0, %c0_0] : memref<4x128xf32, #tpu.memory_space<vmem>>, vector<4x128xf32>
    %c0_1 = arith.constant 0 : index
    %c0_2 = arith.constant 0 : index
    %1 = vector.load %arg2[%c0_1, %c0_2] : memref<6x128xf32, #tpu.memory_space<vmem>>, vector<6x128xf32>
    %2 = vector.extract_strided_slice %1 {offsets = [0, 0], sizes = [1, 128], strides = [1, 1]} : vector<6x128xf32> to vector<1x128xf32>
    %c0_3 = arith.constant 0 : index
    %c0_4 = arith.constant 0 : index
    %c0_5 = arith.constant 0 : index
    %3 = vector.load %arg3[%c0_3, %c0_4, %c0_5] : memref<2x32x4xf32, #tpu.memory_space<vmem>>, vector<1x32x4xf32>
    %4 = vector.shape_cast %3 : vector<1x32x4xf32> to vector<32x4xf32>
    %cst = arith.constant dense<0.000000e+00> : vector<32x128xf32>
    %5 = tpu.matmul %4, %0, %cst {dimension_numbers = #tpu.dot_dimension_numbers<[1], [0], [0], [1], [0, 0, 1, 1], [], []>} : vector<32x4xf32>, vector<4x128xf32>, vector<32x128xf32> -> vector<32x128xf32>
    %c0_6 = arith.constant 0 : index
    %c0_7 = arith.constant 0 : index
    %c0_8 = arith.constant 0 : index
    %6 = vector.load %arg4[%c0_6, %c0_7, %c0_8] : memref<2x32x6xf32, #tpu.memory_space<vmem>>, vector<1x32x6xf32>
    %7 = vector.shape_cast %6 : vector<1x32x6xf32> to vector<32x6xf32>
    %cst_9 = arith.constant dense<0.000000e+00> : vector<32x128xf32>
    %8 = tpu.matmul %7, %1, %cst_9 {dimension_numbers = #tpu.dot_dimension_numbers<[1], [0], [0], [1], [0, 0, 1, 1], [], []>} : vector<32x6xf32>, vector<6x128xf32>, vector<32x128xf32> -> vector<32x128xf32>
    %9 = arith.addf %5, %8 : vector<32x128xf32>
    %c0_10 = arith.constant 0 : index
    %c0_11 = arith.constant 0 : index
    %c0_12 = arith.constant 0 : index
    %10 = vector.load %arg5[%c0_10, %c0_11, %c0_12] : memref<2x32x1xf32, #tpu.memory_space<vmem>>, vector<1x32x1xf32>
    %11 = vector.shape_cast %10 : vector<1x32x1xf32> to vector<32x1xf32>
    %12 = vector.broadcast %11 : vector<32x1xf32> to vector<32x128xf32>
    %13 = arith.addf %9, %12 : vector<32x128xf32>
    %cst_13 = arith.constant 0.000000e+00 : f32
    %14 = vector.broadcast %cst_13 : f32 to vector<32x128xf32>
    %15 = arith.maximumf %13, %14 : vector<32x128xf32>
    %c0_14 = arith.constant 0 : index
    %c0_15 = arith.constant 0 : index
    %c0_16 = arith.constant 0 : index
    %16 = vector.load %arg6[%c0_14, %c0_15, %c0_16] : memref<2x32x32xf32, #tpu.memory_space<vmem>>, vector<1x32x32xf32>
    %17 = vector.shape_cast %16 : vector<1x32x32xf32> to vector<32x32xf32>
    %cst_17 = arith.constant dense<0.000000e+00> : vector<32x128xf32>
    %18 = tpu.matmul %17, %15, %cst_17 {dimension_numbers = #tpu.dot_dimension_numbers<[1], [0], [0], [1], [0, 0, 1, 1], [], []>} : vector<32x32xf32>, vector<32x128xf32>, vector<32x128xf32> -> vector<32x128xf32>
    %c0_18 = arith.constant 0 : index
    %c0_19 = arith.constant 0 : index
    %c0_20 = arith.constant 0 : index
    %19 = vector.load %arg7[%c0_18, %c0_19, %c0_20] : memref<2x32x1xf32, #tpu.memory_space<vmem>>, vector<1x32x1xf32>
    %20 = vector.shape_cast %19 : vector<1x32x1xf32> to vector<32x1xf32>
    %21 = vector.broadcast %20 : vector<32x1xf32> to vector<32x128xf32>
    %22 = arith.addf %18, %21 : vector<32x128xf32>
    %cst_21 = arith.constant 0.000000e+00 : f32
    %23 = vector.broadcast %cst_21 : f32 to vector<32x128xf32>
    %24 = arith.maximumf %22, %23 : vector<32x128xf32>
    %c0_22 = arith.constant 0 : index
    %c0_23 = arith.constant 0 : index
    %c0_24 = arith.constant 0 : index
    %25 = vector.load %arg8[%c0_22, %c0_23, %c0_24] : memref<2x4x32xf32, #tpu.memory_space<vmem>>, vector<1x4x32xf32>
    %26 = vector.shape_cast %25 : vector<1x4x32xf32> to vector<4x32xf32>
    %cst_25 = arith.constant dense<0.000000e+00> : vector<4x128xf32>
    %27 = tpu.matmul %26, %24, %cst_25 {dimension_numbers = #tpu.dot_dimension_numbers<[1], [0], [0], [1], [0, 0, 1, 1], [], []>} : vector<4x32xf32>, vector<32x128xf32>, vector<4x128xf32> -> vector<4x128xf32>
    %c0_26 = arith.constant 0 : index
    %c0_27 = arith.constant 0 : index
    %c0_28 = arith.constant 0 : index
    %28 = vector.load %arg9[%c0_26, %c0_27, %c0_28] : memref<2x4x1xf32, #tpu.memory_space<vmem>>, vector<1x4x1xf32>
    %29 = vector.shape_cast %28 : vector<1x4x1xf32> to vector<4x1xf32>
    %30 = vector.broadcast %29 : vector<4x1xf32> to vector<4x128xf32>
    %31 = arith.addf %27, %30 : vector<4x128xf32>
    %c0_29 = arith.constant 0 : index
    %c0_30 = arith.constant 0 : index
    %c0_31 = arith.constant 0 : index
    %32 = vector.load %arg10[%c0_29, %c0_30, %c0_31] : memref<2x4x1xf32, #tpu.memory_space<vmem>>, vector<1x4x1xf32>
    %33 = vector.shape_cast %32 : vector<1x4x1xf32> to vector<4x1xf32>
    %34 = vector.broadcast %2 : vector<1x128xf32> to vector<4x128xf32>
    %35 = vector.broadcast %33 : vector<4x1xf32> to vector<4x128xf32>
    %36 = arith.mulf %34, %35 : vector<4x128xf32>
    %37 = math.tanh %36 : vector<4x128xf32>
    %38 = arith.mulf %37, %31 : vector<4x128xf32>
    %39 = arith.addf %0, %38 : vector<4x128xf32>
    %c1 = arith.constant 1 : index
    %c0_32 = arith.constant 0 : index
    %c0_33 = arith.constant 0 : index
    %40 = vector.load %arg3[%c1, %c0_32, %c0_33] : memref<2x32x4xf32, #tpu.memory_space<vmem>>, vector<1x32x4xf32>
    %41 = vector.shape_cast %40 : vector<1x32x4xf32> to vector<32x4xf32>
    %cst_34 = arith.constant dense<0.000000e+00> : vector<32x128xf32>
    %42 = tpu.matmul %41, %39, %cst_34 {dimension_numbers = #tpu.dot_dimension_numbers<[1], [0], [0], [1], [0, 0, 1, 1], [], []>} : vector<32x4xf32>, vector<4x128xf32>, vector<32x128xf32> -> vector<32x128xf32>
    %c1_35 = arith.constant 1 : index
    %c0_36 = arith.constant 0 : index
    %c0_37 = arith.constant 0 : index
    %43 = vector.load %arg4[%c1_35, %c0_36, %c0_37] : memref<2x32x6xf32, #tpu.memory_space<vmem>>, vector<1x32x6xf32>
    %44 = vector.shape_cast %43 : vector<1x32x6xf32> to vector<32x6xf32>
    %cst_38 = arith.constant dense<0.000000e+00> : vector<32x128xf32>
    %45 = tpu.matmul %44, %1, %cst_38 {dimension_numbers = #tpu.dot_dimension_numbers<[1], [0], [0], [1], [0, 0, 1, 1], [], []>} : vector<32x6xf32>, vector<6x128xf32>, vector<32x128xf32> -> vector<32x128xf32>
    %46 = arith.addf %42, %45 : vector<32x128xf32>
    %c1_39 = arith.constant 1 : index
    %c0_40 = arith.constant 0 : index
    %c0_41 = arith.constant 0 : index
    %47 = vector.load %arg5[%c1_39, %c0_40, %c0_41] : memref<2x32x1xf32, #tpu.memory_space<vmem>>, vector<1x32x1xf32>
    %48 = vector.shape_cast %47 : vector<1x32x1xf32> to vector<32x1xf32>
    %49 = vector.broadcast %48 : vector<32x1xf32> to vector<32x128xf32>
    %50 = arith.addf %46, %49 : vector<32x128xf32>
    %cst_42 = arith.constant 0.000000e+00 : f32
    %51 = vector.broadcast %cst_42 : f32 to vector<32x128xf32>
    %52 = arith.maximumf %50, %51 : vector<32x128xf32>
    %c1_43 = arith.constant 1 : index
    %c0_44 = arith.constant 0 : index
    %c0_45 = arith.constant 0 : index
    %53 = vector.load %arg6[%c1_43, %c0_44, %c0_45] : memref<2x32x32xf32, #tpu.memory_space<vmem>>, vector<1x32x32xf32>
    %54 = vector.shape_cast %53 : vector<1x32x32xf32> to vector<32x32xf32>
    %cst_46 = arith.constant dense<0.000000e+00> : vector<32x128xf32>
    %55 = tpu.matmul %54, %52, %cst_46 {dimension_numbers = #tpu.dot_dimension_numbers<[1], [0], [0], [1], [0, 0, 1, 1], [], []>} : vector<32x32xf32>, vector<32x128xf32>, vector<32x128xf32> -> vector<32x128xf32>
    %c1_47 = arith.constant 1 : index
    %c0_48 = arith.constant 0 : index
    %c0_49 = arith.constant 0 : index
    %56 = vector.load %arg7[%c1_47, %c0_48, %c0_49] : memref<2x32x1xf32, #tpu.memory_space<vmem>>, vector<1x32x1xf32>
    %57 = vector.shape_cast %56 : vector<1x32x1xf32> to vector<32x1xf32>
    %58 = vector.broadcast %57 : vector<32x1xf32> to vector<32x128xf32>
    %59 = arith.addf %55, %58 : vector<32x128xf32>
    %cst_50 = arith.constant 0.000000e+00 : f32
    %60 = vector.broadcast %cst_50 : f32 to vector<32x128xf32>
    %61 = arith.maximumf %59, %60 : vector<32x128xf32>
    %c1_51 = arith.constant 1 : index
    %c0_52 = arith.constant 0 : index
    %c0_53 = arith.constant 0 : index
    %62 = vector.load %arg8[%c1_51, %c0_52, %c0_53] : memref<2x4x32xf32, #tpu.memory_space<vmem>>, vector<1x4x32xf32>
    %63 = vector.shape_cast %62 : vector<1x4x32xf32> to vector<4x32xf32>
    %cst_54 = arith.constant dense<0.000000e+00> : vector<4x128xf32>
    %64 = tpu.matmul %63, %61, %cst_54 {dimension_numbers = #tpu.dot_dimension_numbers<[1], [0], [0], [1], [0, 0, 1, 1], [], []>} : vector<4x32xf32>, vector<32x128xf32>, vector<4x128xf32> -> vector<4x128xf32>
    %c1_55 = arith.constant 1 : index
    %c0_56 = arith.constant 0 : index
    %c0_57 = arith.constant 0 : index
    %65 = vector.load %arg9[%c1_55, %c0_56, %c0_57] : memref<2x4x1xf32, #tpu.memory_space<vmem>>, vector<1x4x1xf32>
    %66 = vector.shape_cast %65 : vector<1x4x1xf32> to vector<4x1xf32>
    %67 = vector.broadcast %66 : vector<4x1xf32> to vector<4x128xf32>
    %68 = arith.addf %64, %67 : vector<4x128xf32>
    %c1_58 = arith.constant 1 : index
    %c0_59 = arith.constant 0 : index
    %c0_60 = arith.constant 0 : index
    %69 = vector.load %arg10[%c1_58, %c0_59, %c0_60] : memref<2x4x1xf32, #tpu.memory_space<vmem>>, vector<1x4x1xf32>
    %70 = vector.shape_cast %69 : vector<1x4x1xf32> to vector<4x1xf32>
    %71 = vector.broadcast %2 : vector<1x128xf32> to vector<4x128xf32>
    %72 = vector.broadcast %70 : vector<4x1xf32> to vector<4x128xf32>
    %73 = arith.mulf %71, %72 : vector<4x128xf32>
    %74 = math.tanh %73 : vector<4x128xf32>
    %75 = arith.mulf %74, %68 : vector<4x128xf32>
    %76 = arith.addf %39, %75 : vector<4x128xf32>
    %c0_61 = arith.constant 0 : index
    %c0_62 = arith.constant 0 : index
    %77 = vector.load %arg11[%c0_61, %c0_62] : memref<4x128xf32, #tpu.memory_space<vmem>>, vector<4x128xf32>
    tpu.vector_store %arg11[%c0_61, %c0_62], %76 {strides = array<i32>} : memref<4x128xf32, #tpu.memory_space<vmem>>, vector<4x128xf32>,
    return
  }
  func.func @transform_0(%arg0: i32) -> (i32, i32) {
    %c0_i32 = arith.constant 0 : i32
    %c0_i32_0 = arith.constant 0 : i32
    return %c0_i32, %arg0 : i32, i32
  }
  func.func @transform_1(%arg0: i32) -> (i32, i32) {
    %c0_i32 = arith.constant 0 : i32
    %c0_i32_0 = arith.constant 0 : i32
    return %c0_i32, %arg0 : i32, i32
  }
  func.func @transform_2(%arg0: i32) -> (i32, i32, i32) {
    %c0_i32 = arith.constant 0 : i32
    %c0_i32_0 = arith.constant 0 : i32
    %c0_i32_1 = arith.constant 0 : i32
    %c0_i32_2 = arith.constant 0 : i32
    return %c0_i32, %c0_i32_0, %c0_i32_1 : i32, i32, i32
  }
  func.func @transform_3(%arg0: i32) -> (i32, i32, i32) {
    %c0_i32 = arith.constant 0 : i32
    %c0_i32_0 = arith.constant 0 : i32
    %c0_i32_1 = arith.constant 0 : i32
    %c0_i32_2 = arith.constant 0 : i32
    return %c0_i32, %c0_i32_0, %c0_i32_1 : i32, i32, i32
  }
  func.func @transform_4(%arg0: i32) -> (i32, i32, i32) {
    %c0_i32 = arith.constant 0 : i32
    %c0_i32_0 = arith.constant 0 : i32
    %c0_i32_1 = arith.constant 0 : i32
    %c0_i32_2 = arith.constant 0 : i32
    return %c0_i32, %c0_i32_0, %c0_i32_1 : i32, i32, i32
  }
  func.func @transform_5(%arg0: i32) -> (i32, i32, i32) {
    %c0_i32 = arith.constant 0 : i32
    %c0_i32_0 = arith.constant 0 : i32
    %c0_i32_1 = arith.constant 0 : i32
    %c0_i32_2 = arith.constant 0 : i32
    return %c0_i32, %c0_i32_0, %c0_i32_1 : i32, i32, i32
  }
  func.func @transform_6(%arg0: i32) -> (i32, i32, i32) {
    %c0_i32 = arith.constant 0 : i32
    %c0_i32_0 = arith.constant 0 : i32
    %c0_i32_1 = arith.constant 0 : i32
    %c0_i32_2 = arith.constant 0 : i32
    return %c0_i32, %c0_i32_0, %c0_i32_1 : i32, i32, i32
  }
  func.func @transform_7(%arg0: i32) -> (i32, i32, i32) {
    %c0_i32 = arith.constant 0 : i32
    %c0_i32_0 = arith.constant 0 : i32
    %c0_i32_1 = arith.constant 0 : i32
    %c0_i32_2 = arith.constant 0 : i32
    return %c0_i32, %c0_i32_0, %c0_i32_1 : i32, i32, i32
  }
  func.func @transform_8(%arg0: i32) -> (i32, i32, i32) {
    %c0_i32 = arith.constant 0 : i32
    %c0_i32_0 = arith.constant 0 : i32
    %c0_i32_1 = arith.constant 0 : i32
    %c0_i32_2 = arith.constant 0 : i32
    return %c0_i32, %c0_i32_0, %c0_i32_1 : i32, i32, i32
  }
  func.func @transform_9(%arg0: i32) -> (i32, i32, i32) {
    %c0_i32 = arith.constant 0 : i32
    %c0_i32_0 = arith.constant 0 : i32
    %c0_i32_1 = arith.constant 0 : i32
    %c0_i32_2 = arith.constant 0 : i32
    return %c0_i32, %c0_i32_0, %c0_i32_1 : i32, i32, i32
  }
  func.func @transform_10(%arg0: i32) -> (i32, i32) {
    %c0_i32 = arith.constant 0 : i32
    %c0_i32_0 = arith.constant 0 : i32
    return %c0_i32, %arg0 : i32, i32
  }
}

</mosaic_0001>

<bundles_post_ra>
// kernel: tpu_custom_call.1
= control target key start
LH: loop header
LB: loop body
LE: loop exit
PB: predicated region body
PF: predicated region fallthrough
CT: control target
= control target key end

     0   :  { %vm59_vm0 = vcmask 1045504   ;;  %vm46_vm1 = vcmask 48128   ;;  %vm161_vm2 = vcmask 1043456   ;;  %vm148_vm3 = vcmask 31744   ;;  %s1516_s0 = inlined_call_operand.vmem [shape: f32[4,128], index: 0, kind: input, shape index: {}]   ;;  %s1517_s1 = inlined_call_operand.vmem [shape: f32[6,128], index: 1, kind: input, shape index: {}]   ;;  %s1518_s2 = inlined_call_operand.vmem [shape: f32[2,32,4], index: 2, kind: input, shape index: {}]   ;;  %s1519_s3 = inlined_call_operand.vmem [shape: f32[2,32,6], index: 3, kind: input, shape index: {}]   ;;  %s1520_s4 = inlined_call_operand.vmem [shape: f32[2,32,1], index: 4, kind: input, shape index: {}]   ;;  %s1521_s5 = inlined_call_operand.vmem [shape: f32[2,32,32], index: 5, kind: input, shape index: {}]   ;;  %s1522_s6 = inlined_call_operand.vmem [shape: f32[2,32,1], index: 6, kind: input, shape index: {}]   ;;  %s1523_s7 = inlined_call_operand.vmem [shape: f32[2,4,32], index: 7, kind: input, shape index: {}]   ;;  %s1524_s8 = inlined_call_operand.vmem [shape: f32[2,4,1], index: 8, kind: input, shape index: {}]   ;;  %s1525_s9 = inlined_call_operand.vmem [shape: f32[2,4,1], index: 9, kind: input, shape index: {}]   ;;  %s1526_s10 = inlined_call_operand.hbm [shape: f32[4,128], index: 10, kind: output, shape index: {}]  }
   0x1   :  { %v1300_v0 = vld [vmem:[%s1517_s1] sm:$0x3f]  ;;  %v43_v2 = vld [vmem:[%s1519_s3 + $0x8] sm:$0xff]  ;;  %v44_v3 = vld [vmem:[%s1519_s3 + $0x10] sm:$0xff]  ;;  %v1237_v9 = vmov 0  }
   0x2   :  { %v42_v1 = vld [vmem:[%s1519_s3] sm:$0xff]  ;;  %1084 = vmatprep.subr.msk.mxu0 %vm59_vm0, %v1300_v0  ;;  %v252_v6 = vld [vmem:[%s1520_s4 + $0x10] sm:$0xff]  ;;  %v45_v7 = vld [vmem:[%s1519_s3 + $0x18] sm:$0xff]  ;;  %1207 = vset.pattern.permute.xlu0 %v1237_v9 }
   0x3   :  { %1086 = vmatprep.mubr.msk.f32.mxu0 %vm46_vm1, %v42_v1  ;;  %v1317_v4 = vld [vmem:[%s1516_s0] sm:$0xf]  ;;  %1085 = vmatpush3.msk.msra.mxu0 %vm59_vm0, %v1300_v0  ;;  %v251_v10 = vld [vmem:[%s1520_s4 + $0x8] sm:$0xff]  ;;  %v253_v11 = vld [vmem:[%s1520_s4 + $0x18] sm:$0xff] }
   0x4   :  { %1087 = vmatmul.mubr.msk.f32.vlgmr.msra.gmra.mrb[0].mxu0 %vm46_vm1, %v43_v2  ;;  %1092 = vmatprep.subr.msk.mxu0 %vm161_vm2, %v1317_v4  ;;  %v250_v5 = vld [vmem:[%s1520_s4] sm:$0xff]  ;;  %v39_v12 = vld [vmem:[%s1518_s2 + $0x8] sm:$0xff]  ;;  %v40_v13 = vld [vmem:[%s1518_s2 + $0x10] sm:$0xff] }
   0x5   :  { %1089 = vmatprep.mubr.msk.f32.mxu0 %vm46_vm1, %v44_v3  ;;  %1093 = vmatpush3.msk.msra.mxu0 %vm161_vm2, %v1317_v4  ;;  %v38_v8 = vld [vmem:[%s1518_s2] sm:$0xff] }
   0x6   :  { %1208 = vset.pattern.permute.xlu1 %v1237_v9  ;;  %256 = vperm.xlu0 %1207, %v250_v5  }
   0x7   :  { %266 = vperm.xlu1 %1208, %v252_v6   ;;  %1125 = vmatprep.subr.msk.mxu0 %vm59_vm0, %v1300_v0 }
   0x8   :  { %1090 = vmatmul.mubr.msk.f32.gmra.mrb[2].mxu0 %vm46_vm1, %v45_v7 }
   0x9   :  { %1094 = vmatprep.mubr.msk.f32.mxu0 %vm148_vm3, %v38_v8 }
   0xa   :  { %261 = vperm.xlu0 %1207, %v251_v10  }
   0xb   :  { %271 = vperm.xlu1 %1208, %v253_v11  }
   0xc   :  { %15 = vsyncpa [#allocation3], 0  ;;  %1095 = vmatmul.mubr.msk.f32.vlgmr.msra.gmra.mrb[0].mxu0 %vm148_vm3, %v39_v12  ;;  %v286_v14 = vld [vmem:[%s1522_s6] sm:$0xff]  ;;  %v287_v15 = vld [vmem:[%s1522_s6 + $0x8] sm:$0xff]  ;;  %vm310_vm4 = vcmask 261120   ;;  %v1238_v53 = vmov 0.0|0.0  }
   0xd   :  { %1097 = vmatprep.mubr.msk.f32.mxu0 %vm148_vm3, %v40_v13  ;;  %v41_v16 = vld [vmem:[%s1518_s2 + $0x18] sm:$0xff]  ;;  %1126 = vmatpush3.msk.msra.mxu0 %vm59_vm0, %v1300_v0  ;;  %v288_v17 = vld [vmem:[%s1522_s6 + $0x10] sm:$0xff]  ;;  %v492_v19 = vld [vmem:[%s1525_s9] sm:$0xf]  ;;  %vm1239_vm5 = vmmov 0   ;;  %v1240_v54 = vmov 0.0  }
   0xe   :  { %292 = vperm.xlu0 %1207, %v286_v14   ;;  %v289_v18 = vld [vmem:[%s1522_s6 + $0x18] sm:$0xff]  ;;  %v413_v20 = vld [vmem:[%s1524_s8] sm:$0xf]  ;;  %v1019_v22 = vld [vmem:[%s1520_s4 + $0x28] sm:$0xff]  ;;  %s1241_s30 = smov [#allocation2]  }
   0xf   :  { %297 = vperm.xlu1 %1208, %v287_v15   ;;  %v1018_v21 = vld [vmem:[%s1520_s4 + $0x20] sm:$0xff]  ;;  %v1020_v23 = vld [vmem:[%s1520_s4 + $0x30] sm:$0xff]  ;;  %v1021_v24 = vld [vmem:[%s1520_s4 + $0x38] sm:$0xff]  ;;  %s977_s11 = sshll.u32 %s1241_s30, 4  ;;  %s978_s11 = int_to_ptr.vmem [resolvable:$true] %s977_s11 }
  0x10   :  { %1098 = vmatmul.mubr.msk.f32.gmra.mrb[2].mxu0 %vm148_vm3, %v41_v16  ;;  %v1026_v25 = vld [vmem:[%s1522_s6 + $0x20] sm:$0xff]  ;;  %v1027_v26 = vld [vmem:[%s1522_s6 + $0x28] sm:$0xff]  ;;  %v1028_v27 = vld [vmem:[%s1522_s6 + $0x30] sm:$0xff]  ;;  %s1213_s12 = scalar_lea.vmem %s978_s11, 64  ;;  %p1218_p1 = scmp.lt.s32.totalorder %s978_s11, %s978_s11 }
  0x11   :  { %v1029_v28 = vld [vmem:[%s1522_s6 + $0x38] sm:$0xff]  ;;  %v1037_v29 = vld [vmem:[%s1525_s9 + $0x4] sm:$0xf]  ;;  %v283_v50 = vld [vmem:[%s1521_s5 + $0x8] sm:$0xff]  ;;  %p1214_p0 = scmp.ne.s32.totalorder %s978_s11, %s1213_s12  ;;  %p1219_p2 = scmp.lt.s32.totalorder %s1213_s12, %s1213_s12 }
  0x12   :  { %302 = vperm.xlu0 %1207, %v288_v17   ;;  %v1035_v30 = vld [vmem:[%s1524_s8 + $0x4] sm:$0xf]  ;;  %v284_v51 = vld [vmem:[%s1521_s5 + $0x10] sm:$0xff]  ;;  %v285_v52 = vld [vmem:[%s1521_s5 + $0x18] sm:$0xff]  ;;  %v493_v17 = vlaneseq }
  0x13   :  { %307 = vperm.xlu1 %1208, %v289_v18   ;;  %v282_v31 = vld [vmem:[%s1521_s5] sm:$0xff]  ;;  %v1005_v13 = vld [vmem:[%s1519_s3 + $0x28] sm:$0xff]  ;;  %v1006_v14 = vld [vmem:[%s1519_s3 + $0x30] sm:$0xff]  ;;  %p1220_p3 = por %p1219_p2, %p1218_p1 }
  0x14   :  { %1108 = vmatprep.mubr.msk.f32.mxu1 %vm310_vm4, %v282_v31  ;;  %v412_v11 = vld [vmem:[%s1523_s7] sm:$0xf]  ;;  %v1007_v15 = vld [vmem:[%s1519_s3 + $0x38] sm:$0xff]  ;;  %v494_v18 = vshrl.u32 %v493_v17, 7 }
  0x15   :  { %v1004_v12 = vld [vmem:[%s1519_s3 + $0x20] sm:$0xff]  ;;  %p1221_p4 = pnand %p1220_p3, %p1214_p0 }
  0x16   :  { %499 = vperm.xlu0 %1207, %v492_v19   ;;  %1127 = vmatprep.mubr.msk.f32.mxu0 %vm46_vm1, %v1004_v12  ;;  %v1000_v16 = vld [vmem:[%s1518_s2 + $0x20] sm:$0xff]  ;;  %v495_v19 = vsub.s32 0, %v494_v18 }
  0x17   :  { %416 = vperm.xlu1 %1208, %v413_v20   ;;  %1128 = vmatmul.mubr.msk.f32.vlgmr.msra.gmra.mrb[4].mxu0 %vm46_vm1, %v1005_v13  ;;  %v1022_v31 = vld [vmem:[%s1521_s5 + $0x20] sm:$0xff] }
  0x18   :  { %1130 = vmatprep.mubr.msk.f32.mxu0 %vm46_vm1, %v1006_v14  ;;  %v1456_v20 = vrot.slane %v1300_v0, %v495_v19  ;;  %v1002_v0 = vld [vmem:[%s1518_s2 + $0x30] sm:$0xff] }
  0x1a   :  { %720 = vperm.xlu0 %1207, %v1018_v21  }
  0x1b   :  { %725 = vperm.xlu1 %1208, %v1019_v22   ;;  %1131 = vmatmul.mubr.msk.f32.gmra.mrb[6].mxu0 %vm46_vm1, %v1007_v15 }
  0x1c   :  { %1135 = vmatprep.mubr.msk.f32.mxu0 %vm148_vm3, %v1000_v16 }
  0x1e   :  { %730 = vperm.xlu0 %1207, %v1020_v23  }
  0x1f   :  { %735 = vperm.xlu1 %1208, %v1021_v24  }
  0x22   :  { %758 = vperm.xlu0 %1207, %v1026_v25  }
  0x23   :  { %763 = vperm.xlu1 %1208, %v1027_v26  }
  0x26   :  { %768 = vperm.xlu0 %1207, %v1028_v27  }
  0x27   :  { %773 = vperm.xlu1 %1208, %v1029_v28  }
  0x2a   :  { %963 = vperm.xlu0 %1207, %v1037_v29  }
  0x2b   :  { %883 = vperm.xlu1 %1208, %v1035_v30   ;;  %v1001_v30 = vld [vmem:[%s1518_s2 + $0x28] sm:$0xff] }
  0x85   :  { %v257_v32 = vpop.permute.xlu0 %256 }
  0x86   :  { %v267_v33 = vpop.permute.xlu1 %266 }
  0x89   :  { %v262_v34 = vpop.permute.xlu0 %261 }
  0x8a   :  { %v272_v40 = vpop.permute.xlu1 %271 }
  0x8d   :  { %v293_v56 = vpop.permute.xlu0 %292 }
  0x8e   :  { %v298_v55 = vpop.permute.xlu1 %297 }
  0x91   :  { %v303_v2 = vpop.permute.xlu0 %302 }
  0x92   :  { %v308_v62 = vpop.permute.xlu1 %307 }
  0x95   :  { %v500_v21 = vpop.permute.xlu0 %499 }
  0x96   :  { %v502_v22 = vmul.f32 %v500_v21, %v1456_v20  ;;  %v417_v23 = vpop.permute.xlu1 %416 }
  0x98   :  { %1209 = vtanh.f32 %v502_v22 }
  0xa2   :  { %v1210_v27 = vpop.eup %1209 }
  0xdf   :  { %v1096_v35 = vpop.f32.mrb[0].mxu0 }
  0xe0   :  { %v275_v36 = vadd.f32 %v1096_v35, %v262_v34  ;;  %v231_v37 = vpop.f32.mrb[1].mxu0 }
  0xe1   :  { %v274_v38 = vadd.f32 %v257_v32, %v231_v37  ;;  %v726_v32 = vpop.permute.xlu1 %725 }
  0xe2   :  { %v279_v39 = vmax.f32 %v275_v36, 0.0 }
  0xe3   :  { %v278_v41 = vmax.f32 %v274_v38, 0.0  ;;  %v1099_v42 = vpop.f32.mrb[2].mxu0 }
  0xe4   :  { %v277_v43 = vadd.f32 %v1099_v42, %v272_v40  ;;  %v241_v44 = vpop.f32.mrb[3].mxu0 }
  0xe5   :  { %v276_v45 = vadd.f32 %v267_v33, %v241_v44  ;;  %v1166_v46 = vpack.c.bf16 %v279_v39, %v278_v41  ;;  %v721_v33 = vpop.permute.xlu0 %720  ;;  %v736_v39 = vpop.permute.xlu1 %735 }
  0xe6   :  { %v281_v47 = vmax.f32 %v277_v43, 0.0 }
  0xe7   :  { %v280_v48 = vmax.f32 %v276_v45, 0.0  ;;  %1167 = vmatprep.subr.bf16.mxu1 %v1166_v46 }
  0xe8   :  { %1169 = vmatpush3.bf16.msra.mxu1 %v1166_v46 }
  0xe9   :  { %v1170_v49 = vpack.c.bf16 %v281_v47, %v280_v48  ;;  %v731_v42 = vpop.permute.xlu0 %730 }
  0xeb   :  { %1171 = vmatprep.subr.bf16.mxu1 %v1170_v49 }
  0xec   :  { %1173 = vmatpush3.bf16.msra.mxu1 %v1170_v49 }
  0xed   :  { %1174 = vmatprep.subr.bf16.mxu1 %v1238_v53 }
  0xef   :  { %1109 = vmatmul.mubr.msk.f32.vlgmr.msra.gmra.mrb[0].mxu1 %vm310_vm4, %v283_v50  ;;  %v1023_v50 = vld [vmem:[%s1521_s5 + $0x28] sm:$0xff] }
  0xf0   :  { %1111 = vmatprep.mubr.msk.f32.mxu1 %vm310_vm4, %v284_v51  ;;  %v1024_v51 = vld [vmem:[%s1521_s5 + $0x30] sm:$0xff] }
  0xf3   :  { %1112 = vmatmul.mubr.msk.f32.gmra.mrb[2].mxu1 %vm310_vm4, %v285_v52  ;;  %v1025_v52 = vld [vmem:[%s1521_s5 + $0x38] sm:$0xff] }
  0xf4   :  { %1122 = vmatprep.mubr.msk.f32.mxu1 %vm1239_vm5, %v1240_v54 }
 0x1c2   :  { %v1110_v57 = vpop.f32.mrb[0].mxu1 }
 0x1c3   :  { %v395_v58 = vadd.f32 %v1110_v57, %v298_v55  ;;  %v389_v59 = vpop.f32.mrb[1].mxu1  ;;  %v764_v55 = vpop.permute.xlu1 %763 }
 0x1c4   :  { %v390_v60 = vadd.f32 %v389_v59, %v293_v56  ;;  %v759_v56 = vpop.permute.xlu0 %758 }
 0x1c5   :  { %v409_v61 = vmax.f32 %v395_v58, 0.0 }
 0x1c6   :  { %v408_v63 = vmax.f32 %v390_v60, 0.0  ;;  %v1113_v1 = vpop.f32.mrb[2].mxu1 }
 0x1c7   :  { %v405_v3 = vadd.f32 %v1113_v1, %v308_v62  ;;  %v399_v5 = vpop.f32.mrb[3].mxu1  ;;  %v774_v62 = vpop.permute.xlu1 %773 }
 0x1c8   :  { %v1175_v6 = vpack.c.bf16 %v409_v61, %v408_v63  ;;  %v400_v7 = vadd.f32 %v399_v5, %v303_v2  ;;  %v769_v2 = vpop.permute.xlu0 %768 }
 0x1c9   :  { %v411_v8 = vmax.f32 %v405_v3, 0.0 }
 0x1ca   :  { %v410_v9 = vmax.f32 %v400_v7, 0.0  ;;  %1176 = vmatpush3.bf16.msra.mxu1 %v1175_v6 }
 0x1cb   :  { %1177 = vmatprep.subr.bf16.mxu1 %v1238_v53  ;;  %v884_v13 = vpop.permute.xlu1 %883 }
 0x1cc   :  { %v1178_v10 = vpack.c.bf16 %v411_v8, %v410_v9 }
 0x1ce   :  { %1179 = vmatpush3.bf16.msra.mxu1 %v1178_v10  ;;  %v1034_v10 = vld [vmem:[%s1523_s7 + $0x4] sm:$0xf] }
 0x1d1   :  { %1123 = vmatmul.mubr.msk.f32.vlgmr.msra.gmra.mrb[4].mxu1 %vm310_vm4, %v412_v11  ;;  %v964_v11 = vpop.permute.xlu0 %963 }
 0x1d2   :  { %1149 = vmatprep.mubr.msk.f32.mxu1 %vm310_vm4, %v1022_v31  ;;  %v966_v12 = vmul.f32 %v964_v11, %v1456_v20 }
 0x1d4   :  { %1211 = vtanh.f32 %v966_v12 }
 0x1de   :  { %v1212_v17 = vpop.eup %1211 }
 0x2a4   :  { %v488_v24 = vpop.f32.mrb[4].mxu1 }
 0x2a5   :  { %v489_v25 = vadd.f32 %v488_v24, %v417_v23  ;;  %v1124_v26 = vpop.f32.mrb[5].mxu1 }
 0x2a7   :  { %v504_v28 = vmul.f32 %v1210_v27, %v489_v25 }
 0x2a9   :  { %v1460_v29 = vadd.f32 %v504_v28, %v1317_v4  ;;  %v1003_v4 = vld [vmem:[%s1518_s2 + $0x38] sm:$0xff] }
 0x2ab   :  { %1133 = vmatprep.subr.msk.mxu0 %vm161_vm2, %v1460_v29 }
 0x2ac   :  { %1134 = vmatpush3.msk.msra.mxu0 %vm161_vm2, %v1460_v29 }
 0x2ad   :  { %1136 = vmatmul.mubr.msk.f32.vlgmr.msra.gmra.mrb[4].mxu0 %vm148_vm3, %v1001_v30 }
 0x2ae   :  { %1138 = vmatprep.mubr.msk.f32.mxu0 %vm148_vm3, %v1002_v0 }
 0x2b1   :  { %1139 = vmatmul.mubr.msk.f32.gmra.mrb[6].mxu0 %vm148_vm3, %v1003_v4 }
 0x380   :  { %v1137_v34 = vpop.f32.mrb[4].mxu0 }
 0x381   :  { %v739_v35 = vadd.f32 %v1137_v34, %v726_v32  ;;  %v694_v36 = vpop.f32.mrb[5].mxu0 }
 0x382   :  { %v738_v37 = vadd.f32 %v721_v33, %v694_v36 }
 0x383   :  { %v743_v38 = vmax.f32 %v739_v35, 0.0 }
 0x384   :  { %v742_v40 = vmax.f32 %v738_v37, 0.0  ;;  %v1140_v41 = vpop.f32.mrb[6].mxu0 }
 0x385   :  { %v741_v43 = vadd.f32 %v1140_v41, %v736_v39  ;;  %v704_v44 = vpop.f32.mrb[7].mxu0 }
 0x386   :  { %v1180_v45 = vpack.c.bf16 %v743_v38, %v742_v40  ;;  %v740_v46 = vadd.f32 %v731_v42, %v704_v44 }
 0x387   :  { %v745_v47 = vmax.f32 %v741_v43, 0.0 }
 0x388   :  { %v744_v48 = vmax.f32 %v740_v46, 0.0  ;;  %1181 = vmatprep.subr.bf16.mxu1 %v1180_v45 }
 0x389   :  { %1183 = vmatpush3.bf16.msra.mxu1 %v1180_v45 }
 0x38a   :  { %v1184_v49 = vpack.c.bf16 %v745_v47, %v744_v48 }
 0x38c   :  { %1185 = vmatprep.subr.bf16.mxu1 %v1184_v49 }
 0x38d   :  { %1187 = vmatpush3.bf16.msra.mxu1 %v1184_v49 }
 0x38e   :  { %1188 = vmatprep.subr.bf16.mxu1 %v1238_v53 }
 0x390   :  { %1150 = vmatmul.mubr.msk.f32.vlgmr.msra.gmra.mrb[6].mxu1 %vm310_vm4, %v1023_v50 }
 0x391   :  { %1152 = vmatprep.mubr.msk.f32.mxu1 %vm310_vm4, %v1024_v51 }
 0x394   :  { %1153 = vmatmul.mubr.msk.f32.gmra.mrb[8].mxu1 %vm310_vm4, %v1025_v52 }
 0x395   :  { %1163 = vmatprep.mubr.msk.f32.mxu1 %vm1239_vm5, %v1240_v54 }
 0x463   :  { %v1151_v57 = vpop.f32.mrb[6].mxu1 }
 0x464   :  { %v860_v58 = vadd.f32 %v1151_v57, %v764_v55  ;;  %v854_v59 = vpop.f32.mrb[7].mxu1 }
 0x465   :  { %v855_v60 = vadd.f32 %v854_v59, %v759_v56 }
 0x466   :  { %v874_v61 = vmax.f32 %v860_v58, 0.0 }
 0x467   :  { %v873_v63 = vmax.f32 %v855_v60, 0.0  ;;  %v1154_v1 = vpop.f32.mrb[8].mxu1 }
 0x468   :  { %v870_v3 = vadd.f32 %v1154_v1, %v774_v62  ;;  %v864_v5 = vpop.f32.mrb[9].mxu1 }
 0x469   :  { %v1189_v6 = vpack.c.bf16 %v874_v61, %v873_v63  ;;  %v865_v7 = vadd.f32 %v864_v5, %v769_v2 }
 0x46a   :  { %v876_v8 = vmax.f32 %v870_v3, 0.0 }
 0x46b   :  { %v875_v9 = vmax.f32 %v865_v7, 0.0  ;;  %1190 = vmatpush3.bf16.msra.mxu1 %v1189_v6 }
 0x46c   :  { %1191 = vmatprep.subr.bf16.mxu1 %v1238_v53 }
 0x46d   :  { %v1192_v54 = vpack.c.bf16 %v876_v8, %v875_v9 }
 0x46f   :  { %1193 = vmatpush3.bf16.msra.mxu1 %v1192_v54 }
 0x472   :  { %1164 = vmatmul.mubr.msk.f32.vlgmr.msra.gmra.mrb[10].mxu1 %vm310_vm4, %v1034_v10 }
 0x545   :  { %v955_v14 = vpop.f32.mrb[10].mxu1 }
 0x546   :  { %v956_v15 = vadd.f32 %v955_v14, %v884_v13  ;;  %v1165_v16 = vpop.f32.mrb[11].mxu1 }
 0x548   :  { %v968_v53 = vmul.f32 %v1212_v17, %v956_v15 }
 0x54a   :  { %v969_v18 = vadd.f32 %v968_v53, %v1460_v29 }
 0x54c   :  { %970 = vst [vmem:[#allocation2] sm:$0xf] %v969_v18 }
 0x54d   :  { %1224 = shalt.err (!%p1221_p4)
}
 0x54e   :  { %s1225_s14 = scalar_lea.hbm %s1526_s10, 64 }
 0x54f   :  { %p1226_p5 = scmp.ne.s32.totalorder %s1526_s10, %s1225_s14  ;;  %p1229_p6 = scmp.lt.u32.totalorder %s1225_s14, %s1526_s10 }
 0x551   :  { %p1231_p7 = pnand %p1229_p6, %p1226_p5 }
 0x553   :  { %1234 = shalt.err (!%p1231_p7)
}
 0x554   :  { %980 = dma.vmem_to_hbm [thread:$0]  %s978_s11, 64, %s1526_s10, [#allocation3]  }
 0x555   :  { %1235 = dma.done.wait [#allocation3], 64  }
 0x556   :  { %1236 = vsyncadd [#allocation3], 4294967232 }
 0x557   :  { %984 = vsyncpa [#allocation3], 1 }

</bundles_post_ra>
